<compile_context>
chip_gen: v6e
topology: v6e:2x2x1
jax: 0.10.0
libtpu: 0.0.40
codegen_flags: <defaults>
</compile_context>

<pallas_src>
import functools
import math

import jax
import jax.numpy as jnp
from jax import lax
from jax.experimental import pallas as pl
from jax.experimental.pallas import tpu as pltpu


def _round_up(n, m):
    return ((n + m - 1) // m) * m


def _fused_mlp_kernel(*refs, num_layers, gelu_flags, out_dims, approx_gelu):
    """refs = (x_ref, wt0, b0, wt1, b1, ..., out0, out1, ...)."""
    x_ref = refs[0]
    out_refs = refs[1 + 2 * num_layers:]
    inv_sqrt2 = 1.0 / math.sqrt(2.0)

    h = x_ref[...].astype(jnp.float32)
    for i in range(num_layers):
        wt = refs[1 + 2 * i][...]      # (K_in_pad, N_pad), bf16, VMEM-resident
        b = refs[2 + 2 * i][...]       # (1, N_pad), f32
        # MXU runs in the weight dtype (bf16 by default) with f32 accumulate.
        h = jnp.dot(h.astype(wt.dtype), wt,
                    preferred_element_type=jnp.float32) + b
        if gelu_flags[i]:
            if approx_gelu:
                # tanh approximation -> EUP slot (otherwise idle here)
                h = jax.nn.gelu(h, approximate=True)
            else:
                # exact GELU (torch.nn.GELU default), f32 VPU path
                h = 0.5 * h * (1.0 + lax.erf(h * inv_sqrt2))
        # Store only the logical feature width: no padded-HBM write
        # amplification, no wrapper-side slice pass. Padded columns of h stay
        # exactly 0 (zero weight rows/cols, zero bias, GELU(0)=0), so chaining
        # the padded h into the next layer is exact.
        out_refs[i][...] = h[:, :out_dims[i]].astype(out_refs[i].dtype)


def _choose_tiling(M, K0, n_pads, out_dims, weight_bytes, io_itemsize):
    """Pick the biggest M tile that fits a conservative VMEM budget."""
    # Bytes streamed per row of the M tile: double-buffered x tile, per-layer
    # double-buffered output tiles, plus a conservative term for the f32 live
    # intermediates inside the kernel body.
    per_row = 2 * K0 * io_itemsize
    per_row += sum(2 * n * io_itemsize for n in out_dims)
    per_row += 4 * (K0 + sum(n_pads))
    # Resident weights + biases (count twice for the pipeliner's buffering).
    resident = 2 * weight_bytes
    budget = 40 * 1024 * 1024          # conservative: fits v7x's 64 MiB VMEM
    avail = max(budget - resident, 1 << 20)

    tm = min(M, max(8, (avail // per_row) // 8 * 8), 2048)
    if tm < M:
        tm = max(8, (tm // 8) * 8)     # (8,128) rule when not full-dim
    # v7x has 2 TensorCores: ensure the "parallel" M axis has >= 2 tiles so
    # the grid can shard across them (weights stay resident via constant
    # index maps, so the extra grid step is essentially free).
    if M >= 16 and tm >= M:
        tm = min(tm, _round_up(-(-M // 2), 8))

    est_vmem = resident + tm * per_row + (4 << 20)
    # Above the v5e (16 MiB) / v6e-v7x (32 MiB) scoped defaults, but safely
    # below v7x's 64 MiB physical VMEM.
    vmem_limit = int(min(56 << 20, max(est_vmem, 32 << 20)))
    return tm, vmem_limit


def fused_mlp(x, wt_list, b_list, gelu_flags, out_dims, approx_gelu=False):
    """Single Pallas call computing every layer; returns list of embeddings.

    x:        (M, K0) f32
    wt_list:  per-layer padded W^T, shape (K_in_pad, N_pad), N_pad % 128 == 0
              (bf16 by default)
    b_list:   per-layer padded bias, shape (1, N_pad), f32
    out_dims: logical output width per layer (output shapes are exact).
    """
    M, K0 = x.shape
    num_layers = len(wt_list)
    n_pads = [wt.shape[1] for wt in wt_list]
    weight_bytes = sum(int(wt.size) * wt.dtype.itemsize
                       + int(b.size) * b.dtype.itemsize
                       for wt, b in zip(wt_list, b_list))

    tm, vmem_limit = _choose_tiling(M, K0, n_pads, out_dims, weight_bytes,
                                    x.dtype.itemsize)
    grid = (pl.cdiv(M, tm),)

    in_specs = [pl.BlockSpec((tm, K0), lambda i: (i, 0))]
    operands = [x]
    for wt, b in zip(wt_list, b_list):
        k_in, n_pad = wt.shape
        # Constant index maps -> weights/biases stay VMEM-resident across the
        # M grid (no re-fetch between tiles).
        in_specs.append(pl.BlockSpec((k_in, n_pad), lambda i: (0, 0)))
        in_specs.append(pl.BlockSpec((1, n_pad), lambda i: (0, 0)))
        operands.append(wt)
        operands.append(b)

    out_shapes = tuple(jax.ShapeDtypeStruct((M, n), x.dtype) for n in out_dims)
    out_specs = tuple(pl.BlockSpec((tm, n), lambda i: (i, 0)) for n in out_dims)

    flops = 2 * M * sum(wt.shape[0] * wt.shape[1] for wt in wt_list)
    transcendentals = M * sum(n for n, g in zip(n_pads, gelu_flags) if g)
    bytes_accessed = (int(x.size) * x.dtype.itemsize + weight_bytes
                      + sum(M * n for n in out_dims) * x.dtype.itemsize)

    kernel = functools.partial(
        _fused_mlp_kernel,
        num_layers=num_layers,
        gelu_flags=tuple(bool(g) for g in gelu_flags),
        out_dims=tuple(int(n) for n in out_dims),
        approx_gelu=bool(approx_gelu),
    )

    outs = pl.pallas_call(
        kernel,
        out_shape=out_shapes,
        grid_spec=pl.GridSpec(grid=grid, in_specs=in_specs, out_specs=out_specs),
        compiler_params=pltpu.CompilerParams(
            dimension_semantics=("parallel",),
            vmem_limit_bytes=vmem_limit,
        ),
        cost_estimate=pl.CostEstimate(
            flops=flops,
            transcendentals=transcendentals,
            bytes_accessed=bytes_accessed,
        ),
    )(*operands)
    return list(outs)


class LinearBlock:
    """JAX/Pallas port of HGDC-DTA LinearBlock (forward returns all embeddings)."""

    def __init__(self, linear_layers_dim, dropout_rate=0.0,
                 gelu_layers_index=(), dropout_layers_index=(), key=None,
                 use_bf16_matmul=True, approx_gelu=False):
        if key is None:
            key = jax.random.PRNGKey(0)
        self.gelu_layers_index = set(gelu_layers_index)
        self.dropout_layers_index = set(dropout_layers_index)
        self.dropout_rate = dropout_rate
        self.approx_gelu = approx_gelu
        if dropout_rate > 0.0 and len(self.dropout_layers_index) > 0:
            # TODO(synk): training-mode dropout masking not implemented.
            raise NotImplementedError(
                "training-mode dropout not supported; use dropout_rate=0.0")

        num_layers = len(linear_layers_dim) - 1
        self.num_layers = num_layers
        self.out_dims = [linear_layers_dim[i + 1] for i in range(num_layers)]
        self.gelu_flags = [i in self.gelu_layers_index for i in range(num_layers)]

        w_dtype = jnp.bfloat16 if use_bf16_matmul else jnp.float32

        # Original (PyTorch-layout) f32 params for reference checking.
        self.weights = []
        self.biases = []
        # Pre-transposed, lane-padded (and bf16-cast) params for the kernel.
        self.wt_padded = []
        self.b_padded = []

        k_in_pad = linear_layers_dim[0]   # first layer consumes x unpadded
        for i in range(num_layers):
            fan_in = linear_layers_dim[i]
            fan_out = linear_layers_dim[i + 1]
            key, kw, kb = jax.random.split(key, 3)
            bound = 1.0 / math.sqrt(fan_in)
            w = jax.random.uniform(kw, (fan_out, fan_in), jnp.float32,
                                   minval=-bound, maxval=bound)
            b = jax.random.uniform(kb, (fan_out,), jnp.float32,
                                   minval=-bound, maxval=bound)
            self.weights.append(w)
            self.biases.append(b)

            n_pad = _round_up(fan_out, 128)
            wt = jnp.zeros((k_in_pad, n_pad), jnp.float32)
            wt = wt.at[:fan_in, :fan_out].set(w.T)
            bp = jnp.zeros((1, n_pad), jnp.float32)
            bp = bp.at[0, :fan_out].set(b)
            self.wt_padded.append(wt.astype(w_dtype))
            self.b_padded.append(bp)          # bias stays f32 (added post-MXU)
            k_in_pad = n_pad

    def __call__(self, x):
        # One fused Pallas call for the whole block; dropout (rate 0.0 / eval)
        # is identity, so embeddings come straight out of the kernel at their
        # logical widths.
        return fused_mlp(x, self.wt_padded, self.b_padded,
                         self.gelu_flags, self.out_dims,
                         approx_gelu=self.approx_gelu)


def _reference_forward(block, x):
    out = x
    embs = []
    for i, (w, b) in enumerate(zip(block.weights, block.biases)):
        out = out @ w.T + b
        if i in block.gelu_layers_index:
            out = 0.5 * out * (1.0 + lax.erf(out / math.sqrt(2.0)))
        embs.append(out)
    return embs


if __name__ == "__main__":
    key = jax.random.PRNGKey(0)
    kx, kp = jax.random.split(key)

    # NOTE: at these demo sizes the kernel is launch/overhead-dominated;
    # real speedups come from batching more rows into M before the call.
    batch = 8
    dims = [32, 64, 32, 1]          # small DTA-style MLP head
    gelu_idx = [0, 1]               # GELU after the first two layers

    x = jax.random.normal(kx, (batch, dims[0]), jnp.float32)

    block = LinearBlock(dims, dropout_rate=0.0,
                        gelu_layers_index=gelu_idx,
                        dropout_layers_index=[], key=kp,
                        use_bf16_matmul=True, approx_gelu=False)

    embeddings = block(x)
    embeddings = [jax.block_until_ready(e) for e in embeddings]

    refs = _reference_forward(block, x)
    for got, ref in zip(embeddings, refs):
        assert got.shape == ref.shape
        # bf16 MXU operands (f32 accumulate) -> relaxed tolerance.
        assert jnp.allclose(got, ref, atol=2e-2, rtol=2e-2)

    print("KERNEL_OK")
</pallas_src>

<mosaic_0001>
module attributes {stable_mosaic.version = 11 : i64} {
  func.func @_fused_mlp_kernel(%arg0: i32, %arg1: memref<8x32xf32, #tpu.memory_space<vmem>>, %arg2: memref<32x128xbf16, #tpu.memory_space<vmem>>, %arg3: memref<1x128xf32, #tpu.memory_space<vmem>>, %arg4: memref<128x128xbf16, #tpu.memory_space<vmem>>, %arg5: memref<1x128xf32, #tpu.memory_space<vmem>>, %arg6: memref<128x128xbf16, #tpu.memory_space<vmem>>, %arg7: memref<1x128xf32, #tpu.memory_space<vmem>>, %arg8: memref<8x64xf32, #tpu.memory_space<vmem>>, %arg9: memref<8x32xf32, #tpu.memory_space<vmem>>, %arg10: memref<8x1xf32, #tpu.memory_space<vmem>>) attributes {dimension_semantics = [#tpu.dimension_semantics<parallel>], iteration_bounds = array<i64: 1>, scalar_prefetch = 0 : i64, scratch_operands = 0 : i64, tpu.core_type = #tpu.core_type<tc>, window_params = [{transform_indices = @transform_0, window_bounds = array<i64: 8, 32>}, {pipeline_mode = #tpu.pipeline_mode<synchronous>, transform_indices = @transform_1, window_bounds = array<i64: 32, 128>}, {pipeline_mode = #tpu.pipeline_mode<synchronous>, transform_indices = @transform_2, window_bounds = array<i64: 1, 128>}, {pipeline_mode = #tpu.pipeline_mode<synchronous>, transform_indices = @transform_3, window_bounds = array<i64: 128, 128>}, {pipeline_mode = #tpu.pipeline_mode<synchronous>, transform_indices = @transform_4, window_bounds = array<i64: 1, 128>}, {pipeline_mode = #tpu.pipeline_mode<synchronous>, transform_indices = @transform_5, window_bounds = array<i64: 128, 128>}, {pipeline_mode = #tpu.pipeline_mode<synchronous>, transform_indices = @transform_6, window_bounds = array<i64: 1, 128>}, {transform_indices = @transform_7, window_bounds = array<i64: 8, 64>}, {transform_indices = @transform_8, window_bounds = array<i64: 8, 32>}, {transform_indices = @transform_9, window_bounds = array<i64: 8, 1>}]} {
    %c0 = arith.constant 0 : index
    %c0_0 = arith.constant 0 : index
    %0 = vector.load %arg1[%c0, %c0_0] : memref<8x32xf32, #tpu.memory_space<vmem>>, vector<8x32xf32>
    %c0_1 = arith.constant 0 : index
    %c0_2 = arith.constant 0 : index
    %1 = vector.load %arg2[%c0_1, %c0_2] : memref<32x128xbf16, #tpu.memory_space<vmem>>, vector<32x128xbf16>
    %c0_3 = arith.constant 0 : index
    %c0_4 = arith.constant 0 : index
    %2 = vector.load %arg3[%c0_3, %c0_4] : memref<1x128xf32, #tpu.memory_space<vmem>>, vector<1x128xf32>
    %3 = arith.truncf %0 : vector<8x32xf32> to vector<8x32xbf16>
    %cst = arith.constant dense<0.000000e+00> : vector<8x128xf32>
    %4 = tpu.matmul %3, %1, %cst {dimension_numbers = #tpu.dot_dimension_numbers<[1], [0], [0], [1], [0, 0, 1, 1], [], []>} : vector<8x32xbf16>, vector<32x128xbf16>, vector<8x128xf32> -> vector<8x128xf32>
    %5 = vector.broadcast %2 : vector<1x128xf32> to vector<8x128xf32>
    %6 = arith.addf %4, %5 : vector<8x128xf32>
    %cst_5 = arith.constant 5.000000e-01 : f32
    %7 = vector.broadcast %cst_5 : f32 to vector<8x128xf32>
    %8 = arith.mulf %7, %6 : vector<8x128xf32>
    %cst_6 = arith.constant 0.707106769 : f32
    %9 = vector.broadcast %cst_6 : f32 to vector<8x128xf32>
    %10 = arith.mulf %6, %9 : vector<8x128xf32>
    %11 = math.erf %10 : vector<8x128xf32>
    %cst_7 = arith.constant 1.000000e+00 : f32
    %12 = vector.broadcast %cst_7 : f32 to vector<8x128xf32>
    %13 = arith.addf %12, %11 : vector<8x128xf32>
    %14 = arith.mulf %8, %13 : vector<8x128xf32>
    %15 = vector.extract_strided_slice %14 {offsets = [0, 0], sizes = [8, 64], strides = [1, 1]} : vector<8x128xf32> to vector<8x64xf32>
    %c0_8 = arith.constant 0 : index
    %c0_9 = arith.constant 0 : index
    %16 = vector.load %arg8[%c0_8, %c0_9] : memref<8x64xf32, #tpu.memory_space<vmem>>, vector<8x64xf32>
    tpu.vector_store %arg8[%c0_8, %c0_9], %15 {strides = array<i32>} : memref<8x64xf32, #tpu.memory_space<vmem>>, vector<8x64xf32>,
    %c0_10 = arith.constant 0 : index
    %c0_11 = arith.constant 0 : index
    %17 = vector.load %arg4[%c0_10, %c0_11] : memref<128x128xbf16, #tpu.memory_space<vmem>>, vector<128x128xbf16>
    %c0_12 = arith.constant 0 : index
    %c0_13 = arith.constant 0 : index
    %18 = vector.load %arg5[%c0_12, %c0_13] : memref<1x128xf32, #tpu.memory_space<vmem>>, vector<1x128xf32>
    %19 = arith.truncf %14 : vector<8x128xf32> to vector<8x128xbf16>
    %cst_14 = arith.constant dense<0.000000e+00> : vector<8x128xf32>
    %20 = tpu.matmul %19, %17, %cst_14 {dimension_numbers = #tpu.dot_dimension_numbers<[1], [0], [0], [1], [0, 0, 1, 1], [], []>} : vector<8x128xbf16>, vector<128x128xbf16>, vector<8x128xf32> -> vector<8x128xf32>
    %21 = vector.broadcast %18 : vector<1x128xf32> to vector<8x128xf32>
    %22 = arith.addf %20, %21 : vector<8x128xf32>
    %cst_15 = arith.constant 5.000000e-01 : f32
    %23 = vector.broadcast %cst_15 : f32 to vector<8x128xf32>
    %24 = arith.mulf %23, %22 : vector<8x128xf32>
    %cst_16 = arith.constant 0.707106769 : f32
    %25 = vector.broadcast %cst_16 : f32 to vector<8x128xf32>
    %26 = arith.mulf %22, %25 : vector<8x128xf32>
    %27 = math.erf %26 : vector<8x128xf32>
    %cst_17 = arith.constant 1.000000e+00 : f32
    %28 = vector.broadcast %cst_17 : f32 to vector<8x128xf32>
    %29 = arith.addf %28, %27 : vector<8x128xf32>
    %30 = arith.mulf %24, %29 : vector<8x128xf32>
    %31 = vector.extract_strided_slice %30 {offsets = [0, 0], sizes = [8, 32], strides = [1, 1]} : vector<8x128xf32> to vector<8x32xf32>
    %c0_18 = arith.constant 0 : index
    %c0_19 = arith.constant 0 : index
    %32 = vector.load %arg9[%c0_18, %c0_19] : memref<8x32xf32, #tpu.memory_space<vmem>>, vector<8x32xf32>
    tpu.vector_store %arg9[%c0_18, %c0_19], %31 {strides = array<i32>} : memref<8x32xf32, #tpu.memory_space<vmem>>, vector<8x32xf32>,
    %c0_20 = arith.constant 0 : index
    %c0_21 = arith.constant 0 : index
    %33 = vector.load %arg6[%c0_20, %c0_21] : memref<128x128xbf16, #tpu.memory_space<vmem>>, vector<128x128xbf16>
    %c0_22 = arith.constant 0 : index
    %c0_23 = arith.constant 0 : index
    %34 = vector.load %arg7[%c0_22, %c0_23] : memref<1x128xf32, #tpu.memory_space<vmem>>, vector<1x128xf32>
    %35 = arith.truncf %30 : vector<8x128xf32> to vector<8x128xbf16>
    %cst_24 = arith.constant dense<0.000000e+00> : vector<8x128xf32>
    %36 = tpu.matmul %35, %33, %cst_24 {dimension_numbers = #tpu.dot_dimension_numbers<[1], [0], [0], [1], [0, 0, 1, 1], [], []>} : vector<8x128xbf16>, vector<128x128xbf16>, vector<8x128xf32> -> vector<8x128xf32>
    %37 = vector.broadcast %34 : vector<1x128xf32> to vector<8x128xf32>
    %38 = arith.addf %36, %37 : vector<8x128xf32>
    %39 = vector.extract_strided_slice %38 {offsets = [0, 0], sizes = [8, 1], strides = [1, 1]} : vector<8x128xf32> to vector<8x1xf32>
    %c0_25 = arith.constant 0 : index
    %c0_26 = arith.constant 0 : index
    %40 = vector.load %arg10[%c0_25, %c0_26] : memref<8x1xf32, #tpu.memory_space<vmem>>, vector<8x1xf32>
    tpu.vector_store %arg10[%c0_25, %c0_26], %39 {strides = array<i32>} : memref<8x1xf32, #tpu.memory_space<vmem>>, vector<8x1xf32>,
    return
  }
  func.func @transform_0(%arg0: i32) -> (i32, i32) {
    %c0_i32 = arith.constant 0 : i32
    %c0_i32_0 = arith.constant 0 : i32
    return %arg0, %c0_i32 : i32, i32
  }
  func.func @transform_1(%arg0: i32) -> (i32, i32) {
    %c0_i32 = arith.constant 0 : i32
    %c0_i32_0 = arith.constant 0 : i32
    %c0_i32_1 = arith.constant 0 : i32
    return %c0_i32, %c0_i32_0 : i32, i32
  }
  func.func @transform_2(%arg0: i32) -> (i32, i32) {
    %c0_i32 = arith.constant 0 : i32
    %c0_i32_0 = arith.constant 0 : i32
    %c0_i32_1 = arith.constant 0 : i32
    return %c0_i32, %c0_i32_0 : i32, i32
  }
  func.func @transform_3(%arg0: i32) -> (i32, i32) {
    %c0_i32 = arith.constant 0 : i32
    %c0_i32_0 = arith.constant 0 : i32
    %c0_i32_1 = arith.constant 0 : i32
    return %c0_i32, %c0_i32_0 : i32, i32
  }
  func.func @transform_4(%arg0: i32) -> (i32, i32) {
    %c0_i32 = arith.constant 0 : i32
    %c0_i32_0 = arith.constant 0 : i32
    %c0_i32_1 = arith.constant 0 : i32
    return %c0_i32, %c0_i32_0 : i32, i32
  }
  func.func @transform_5(%arg0: i32) -> (i32, i32) {
    %c0_i32 = arith.constant 0 : i32
    %c0_i32_0 = arith.constant 0 : i32
    %c0_i32_1 = arith.constant 0 : i32
    return %c0_i32, %c0_i32_0 : i32, i32
  }
  func.func @transform_6(%arg0: i32) -> (i32, i32) {
    %c0_i32 = arith.constant 0 : i32
    %c0_i32_0 = arith.constant 0 : i32
    %c0_i32_1 = arith.constant 0 : i32
    return %c0_i32, %c0_i32_0 : i32, i32
  }
  func.func @transform_7(%arg0: i32) -> (i32, i32) {
    %c0_i32 = arith.constant 0 : i32
    %c0_i32_0 = arith.constant 0 : i32
    return %arg0, %c0_i32 : i32, i32
  }
  func.func @transform_8(%arg0: i32) -> (i32, i32) {
    %c0_i32 = arith.constant 0 : i32
    %c0_i32_0 = arith.constant 0 : i32
    return %arg0, %c0_i32 : i32, i32
  }
  func.func @transform_9(%arg0: i32) -> (i32, i32) {
    %c0_i32 = arith.constant 0 : i32
    %c0_i32_0 = arith.constant 0 : i32
    return %arg0, %c0_i32 : i32, i32
  }
}

</mosaic_0001>

<bundles_post_ra>
// kernel: tpu_custom_call.1
= control target key start
LH: loop header
LB: loop body
LE: loop exit
PB: predicated region body
PF: predicated region fallthrough
CT: control target
= control target key end

     0   :  { %15 = vsyncpa [#allocation3], 0  ;;  %s806_s0 = inlined_call_operand.hbm [shape: f32[8,32], index: 0, kind: input, shape index: {}]   ;;  %s807_s1 = inlined_call_operand.hbm [shape: bf16[32,128], index: 1, kind: input, shape index: {}]   ;;  %s808_s2 = inlined_call_operand.vmem [shape: f32[1,128], index: 2, kind: input, shape index: {}]   ;;  %s809_s3 = inlined_call_operand.hbm [shape: bf16[128,128], index: 3, kind: input, shape index: {}]   ;;  %s810_s4 = inlined_call_operand.vmem [shape: f32[1,128], index: 4, kind: input, shape index: {}]   ;;  %s811_s5 = inlined_call_operand.hbm [shape: bf16[128,128], index: 5, kind: input, shape index: {}]   ;;  %s812_s6 = inlined_call_operand.vmem [shape: f32[1,128], index: 6, kind: input, shape index: {}]   ;;  %s813_s7 = inlined_call_operand.hbm [shape: f32[8,64], index: 7, kind: output, shape index: {0}]   ;;  %s814_s8 = inlined_call_operand.hbm [shape: f32[8,32], index: 8, kind: output, shape index: {1}]   ;;  %s815_s9 = inlined_call_operand.vmem [shape: f32[8,1], index: 9, kind: output, shape index: {2}]  }
   0x1   :  { %16 = vsyncpa [#allocation6], 0 }
   0x2   :  { %17 = vsyncpa [#allocation9], 0 }
   0x3   :  { %18 = vsyncpa [#allocation4], 0 }
   0x4   :  { %19 = vsyncpa [#allocation12], 0  ;;  %s681_s30 = smov [#allocation5]  }
   0x5   :  { %s35_s10 = sshll.u32 %s681_s30, 4  ;;  %s36_s10 = int_to_ptr.vmem [resolvable:$true] %s35_s10 }
   0x6   :  { %s559_s11 = scalar_lea.vmem %s36_s10, 256  ;;  %p564_p1 = scmp.lt.s32.totalorder %s36_s10, %s36_s10 }
   0x7   :  { %p560_p0 = scmp.ne.s32.totalorder %s36_s10, %s559_s11  ;;  %p565_p2 = scmp.lt.s32.totalorder %s559_s11, %s559_s11 }
   0x9   :  { %p566_p3 = por %p565_p2, %p564_p1 }
   0xb   :  { %p567_p4 = pnand %p566_p3, %p560_p0 }
   0xd   :  { %570 = shalt.err (!%p567_p4)
}
   0xe   :  { %s682_s12 = smov 64   ;;  %s683_s13 = smov 4  }
   0xf   :  { %41 = dma.hbm_to_vmem [thread:$0]  %s807_s1, 256, %s36_s10, [#allocation6], %s682_s12, %s682_s12, %s683_s13  }
  0x10   :  { %s684_s16 = smov [#allocation2]   ;;  %s685_s18 = smov [#allocation7]  }
  0x11   :  { %s26_s17 = sshll.u32 %s684_s16, 4  ;;  %s49_s19 = sshll.u32 %s685_s18, 4  ;;  %s27_s17 = int_to_ptr.vmem [resolvable:$true] %s26_s17  ;;  %s50_s19 = int_to_ptr.vmem [resolvable:$true] %s49_s19 }
  0x12   :  { %s579_s20 = scalar_lea.vmem %s27_s17, 128  ;;  %p584_p6 = scmp.lt.s32.totalorder %s27_s17, %s27_s17 }
  0x13   :  { %p580_p5 = scmp.ne.s32.totalorder %s27_s17, %s579_s20  ;;  %p585_p7 = scmp.lt.s32.totalorder %s579_s20, %s579_s20 }
  0x15   :  { %p586_p8 = por %p585_p7, %p584_p6 }
  0x17   :  { %p587_p9 = pnand %p586_p8, %p580_p5 }
  0x19   :  { %590 = shalt.err (!%p587_p9)
}
  0x1a   :  { %29 = dma.hbm_to_vmem [thread:$0]  %s806_s0, 128, %s27_s17, [#allocation3]  }
  0x1b   :  { %s599_s23 = scalar_lea.vmem %s50_s19, 1024  ;;  %p604_p11 = scmp.lt.s32.totalorder %s50_s19, %s50_s19 }
  0x1c   :  { %p600_p10 = scmp.ne.s32.totalorder %s50_s19, %s599_s23  ;;  %p605_p12 = scmp.lt.s32.totalorder %s599_s23, %s599_s23 }
  0x1e   :  { %p606_p13 = por %p605_p12, %p604_p11 }
  0x20   :  { %p607_p0 = pnand %p606_p13, %p600_p10 }
  0x22   :  { %610 = shalt.err (!%p607_p0)
}
  0x23   :  { %55 = dma.hbm_to_vmem [thread:$0]  %s809_s3, 1024, %s50_s19, [#allocation6], %s682_s12, %s682_s12, %s683_s13  }
  0x24   :  { %s686_s25 = smov [#allocation8]  }
  0x25   :  { %s63_s26 = sshll.u32 %s686_s25, 4  ;;  %s64_s26 = int_to_ptr.vmem [resolvable:$true] %s63_s26 }
  0x26   :  { %s619_s27 = scalar_lea.vmem %s64_s26, 1024  ;;  %p624_p2 = scmp.lt.s32.totalorder %s64_s26, %s64_s26 }
  0x27   :  { %p620_p1 = scmp.ne.s32.totalorder %s64_s26, %s619_s27  ;;  %p625_p3 = scmp.lt.s32.totalorder %s619_s27, %s619_s27 }
  0x29   :  { %p626_p4 = por %p625_p3, %p624_p2 }
  0x2b   :  { %p627_p5 = pnand %p626_p4, %p620_p1 }
  0x2d   :  { %630 = shalt.err (!%p627_p5)
}
  0x2e   :  { %69 = dma.hbm_to_vmem [thread:$0]  %s811_s5, 1024, %s64_s26, [#allocation9], %s682_s12, %s682_s12, %s683_s13  }
  0x2f   :  { %671 = dma.done.wait [#allocation3], 128  }
  0x30   :  { %672 = vsyncadd [#allocation3], 4294967168 }
  0x31   :  { %673 = dma.done.wait [#allocation6], 1280  }
  0x32   :  { %674 = vsyncadd [#allocation6], 4294966016 }
  0x33   :  { %675 = dma.done.wait [#allocation9], 1024  }
  0x34   :  { %676 = vsyncadd [#allocation9], 4294966272  ;;  %v687_v0 = vmov 0.0   ;;  %vm688_vm0 = vmmov 0   ;;  %v529_v1 = vld [vmem:[#allocation5 + $0x8] sm:$0xff]   ;;  %v530_v2 = vld [vmem:[#allocation5] sm:$0xff]  }
  0x35   :  { %471 = vmatprep.subr.bf16.mxu0 %v687_v0  ;;  %475 = vmatprep.mubr.msk.bf16.mxu0 %vm688_vm0, %v687_v0  ;;  %v85_v3 = vld [vmem:[#allocation2] sm:$0xff]  ;;  %v531_v4 = vld [vmem:[#allocation7 + $0x38] sm:$0xff]   ;;  %vm110_vm1 = vcmask 261120   ;;  %v532_v5 = vld [vmem:[#allocation7 + $0x30] sm:$0xff]   ;;  %vm159_vm2 = vcmask 523264   ;;  %s689_s30 = smov [#allocation10]  }
  0x36   :  { %479 = vmatprep.subr.bf16.mxu1 %v687_v0  ;;  %495 = vmatprep.mubr.msk.bf16.mxu1 %vm688_vm0, %v687_v0  ;;  %v91_v6 = vpack.c.bf16 %v85_v3, %v85_v3  ;;  %v533_v7 = vld [vmem:[#allocation7 + $0x28] sm:$0xff]   ;;  %v534_v8 = vld [vmem:[#allocation7 + $0x20] sm:$0xff]   ;;  %v535_v9 = vld [vmem:[#allocation7 + $0x18] sm:$0xff]   ;;  %s399_s10 = sshll.u32 %s689_s30, 4  ;;  %s690_s11 = smov [#allocation11]   ;;  %s400_s10 = int_to_ptr.vmem [resolvable:$true] %s399_s10 }
  0x37   :  { %472 = vmatpush3.bf16.msra.mxu0 %v529_v1  ;;  %480 = vmatpush3.bf16.msra.mxu1 %v531_v4  ;;  %v536_v10 = vld [vmem:[#allocation7 + $0x10] sm:$0xff]   ;;  %v537_v11 = vld [vmem:[#allocation7 + $0x8] sm:$0xff]   ;;  %v538_v12 = vld [vmem:[#allocation7] sm:$0xff]   ;;  %s409_s12 = sshll.u32 %s690_s11, 4  ;;  %p636_p7 = scmp.lt.s32.totalorder %s400_s10, %s400_s10  ;;  %s410_s12 = int_to_ptr.vmem [resolvable:$true] %s409_s12 }
  0x38   :  { %473 = vmatprep.subr.bf16.mxu0 %v687_v0  ;;  %481 = vmatprep.subr.bf16.mxu1 %v687_v0  ;;  %v539_v13 = vld [vmem:[#allocation8 + $0x38] sm:$0xff]   ;;  %v540_v14 = vld [vmem:[#allocation8 + $0x30] sm:$0xff]   ;;  %v428_v15 = vld [vmem:[%s808_s2] ss:$0 sm:$0xff] }
  0x39   :  { %v541_v27 = vld [vmem:[#allocation8 + $0x28] sm:$0xff]   ;;  %v542_v28 = vld [vmem:[#allocation8 + $0x20] sm:$0xff]   ;;  %v543_v29 = vld [vmem:[#allocation8 + $0x18] sm:$0xff]  }
  0x3a   :  { %v544_v30 = vld [vmem:[#allocation8 + $0x10] sm:$0xff]   ;;  %v545_v31 = vld [vmem:[#allocation8 + $0x8] sm:$0xff]   ;;  %v546_v32 = vld [vmem:[#allocation8] sm:$0xff]  }
  0x3b   :  { %474 = vmatpush3.bf16.msra.mxu0 %v530_v2  ;;  %482 = vmatpush3.bf16.msra.mxu1 %v532_v5  ;;  %v432_v33 = vld [vmem:[%s810_s4] ss:$0 sm:$0xff]  ;;  %s631_s4 = scalar_lea.vmem %s400_s10, 128 }
  0x3c   :  { %499 = vmatprep.subr.bf16.mxu0 %v687_v0  ;;  %483 = vmatprep.subr.bf16.mxu1 %v687_v0  ;;  %p632_p6 = scmp.ne.s32.totalorder %s400_s10, %s631_s4  ;;  %p637_p8 = scmp.lt.s32.totalorder %s631_s4, %s631_s4 }
  0x3e   :  { %476 = vmatmul.mubr.msk.bf16.vlgmr.msra.gmra.mxu0 %vm110_vm1, %v91_v6  ;;  %p638_p9 = por %p637_p8, %p636_p7 }
  0x3f   :  { %515 = vmatprep.mubr.msk.bf16.mxu0 %vm688_vm0, %v687_v0  ;;  %484 = vmatpush3.bf16.msra.mxu1 %v533_v7 }
  0x40   :  { %485 = vmatprep.subr.bf16.mxu1 %v687_v0  ;;  %500 = vmatpush3.bf16.msra.mxu0 %v539_v13  ;;  %p639_p10 = pnand %p638_p9, %p632_p6 }
  0x41   :  { %501 = vmatprep.subr.bf16.mxu0 %v687_v0 }
  0x43   :  { %486 = vmatpush3.bf16.msra.mxu1 %v534_v8 }
  0x44   :  { %487 = vmatprep.subr.bf16.mxu1 %v687_v0  ;;  %502 = vmatpush3.bf16.msra.mxu0 %v540_v14 }
  0x45   :  { %503 = vmatprep.subr.bf16.mxu0 %v687_v0 }
  0x47   :  { %488 = vmatpush3.bf16.msra.mxu1 %v535_v9 }
  0x48   :  { %489 = vmatprep.subr.bf16.mxu1 %v687_v0  ;;  %504 = vmatpush3.bf16.msra.mxu0 %v541_v27 }
  0x49   :  { %505 = vmatprep.subr.bf16.mxu0 %v687_v0 }
  0x4b   :  { %490 = vmatpush3.bf16.msra.mxu1 %v536_v10 }
  0x4c   :  { %491 = vmatprep.subr.bf16.mxu1 %v687_v0  ;;  %506 = vmatpush3.bf16.msra.mxu0 %v542_v28 }
  0x4d   :  { %507 = vmatprep.subr.bf16.mxu0 %v687_v0 }
  0x4f   :  { %492 = vmatpush3.bf16.msra.mxu1 %v537_v11 }
  0x50   :  { %493 = vmatprep.subr.bf16.mxu1 %v687_v0  ;;  %508 = vmatpush3.bf16.msra.mxu0 %v543_v29 }
  0x51   :  { %509 = vmatprep.subr.bf16.mxu0 %v687_v0 }
  0x53   :  { %494 = vmatpush3.bf16.msra.mxu1 %v538_v12 }
  0x54   :  { %510 = vmatpush3.bf16.msra.mxu0 %v544_v30 }
  0x55   :  { %511 = vmatprep.subr.bf16.mxu0 %v687_v0 }
  0x58   :  { %512 = vmatpush3.bf16.msra.mxu0 %v545_v31 }
  0x59   :  { %513 = vmatprep.subr.bf16.mxu0 %v687_v0 }
  0x5c   :  { %514 = vmatpush3.bf16.msra.mxu0 %v546_v32 }
  0xfe   :  { %v148_v16 = vpop.f32.mrf.mxu0 }
  0xff   :  { %v149_v17 = vadd.f32 %v428_v15, %v148_v16 }
 0x100   :  { %v477_v18 = vpop.f32.mrf.mxu0 }
 0x101   :  { %v155_v19 = vmul.f32 0.70710677, %v149_v17  ;;  %v154_v23 = vmul.f32 0.5, %v149_v17 }
 0x102   :  { %v151_v20 = vpop.f32.mrf.mxu0 }
 0x103   :  { %547 = verf.f32 %v155_v19 }
 0x104   :  { %v478_v21 = vpop.f32.mrf.mxu0 }
 0x110   :  { %v548_v22 = vpop.eup %547 }
 0x111   :  { %v157_v24 = vadd.f32 1.0, %v548_v22 }
 0x113   :  { %v158_v25 = vmul.f32 %v157_v24, %v154_v23 }
 0x115   :  { %v178_v26 = vpack.c.bf16 %v158_v25, %v158_v25  ;;  %160 = vst.msk [vmem:[#allocation10] sm:$0xff] %vm159_vm2, %v158_v25 }
 0x117   :  { %496 = vmatmul.mubr.bf16.vlgmr.msra.gmra.mxu1 %v178_v26 }
 0x1d7   :  { %v267_v34 = vpop.f32.mrf.mxu1 }
 0x1d8   :  { %v268_v35 = vadd.f32 %v432_v33, %v267_v34 }
 0x1d9   :  { %v497_v36 = vpop.f32.mrf.mxu1 }
 0x1da   :  { %v274_v37 = vmul.f32 0.70710677, %v268_v35  ;;  %v273_v41 = vmul.f32 0.5, %v268_v35 }
 0x1db   :  { %v270_v38 = vpop.f32.mrf.mxu1 }
 0x1dc   :  { %549 = verf.f32 %v274_v37 }
 0x1dd   :  { %v498_v39 = vpop.f32.mrf.mxu1 }
 0x1e9   :  { %v550_v40 = vpop.eup %549 }
 0x1ea   :  { %v276_v42 = vadd.f32 1.0, %v550_v40 }
 0x1ec   :  { %v277_v43 = vmul.f32 %v276_v42, %v273_v41 }
 0x1ee   :  { %v296_v44 = vpack.c.bf16 %v277_v43, %v277_v43  ;;  %278 = vst.msk [vmem:[#allocation11] sm:$0xff] %vm110_vm1, %v277_v43 }
 0x1f0   :  { %516 = vmatmul.mubr.bf16.vlgmr.msra.gmra.mxu0 %v296_v44 }
 0x1f1   :  { %642 = shalt.err (!%p639_p10)
}
 0x1f2   :  { %402 = dma.vmem_to_hbm [thread:$0]  %s400_s10, 128, %s813_s7, [#allocation4]  }
 0x1f3   :  { %s651_s15 = scalar_lea.vmem %s410_s12, 128  ;;  %p656_p12 = scmp.lt.s32.totalorder %s410_s12, %s410_s12 }
 0x1f4   :  { %p652_p11 = scmp.ne.s32.totalorder %s410_s12, %s651_s15  ;;  %p657_p13 = scmp.lt.s32.totalorder %s651_s15, %s651_s15 }
 0x1f6   :  { %p658_p0 = por %p657_p13, %p656_p12 }
 0x1f8   :  { %p659_p1 = pnand %p658_p0, %p652_p11 }
 0x1fa   :  { %662 = shalt.err (!%p659_p1)
}
 0x1fb   :  { %412 = dma.vmem_to_hbm [thread:$0]  %s410_s12, 128, %s814_s8, [#allocation12]   ;;  %v441_v45 = vld [vmem:[%s812_s6] ss:$0 sm:$0xff]  ;;  %vm391_vm3 = vcmask 7168  }
 0x2b0   :  { %v385_v46 = vpop.f32.mrf.mxu0 }
 0x2b1   :  { %v386_v47 = vadd.f32 %v441_v45, %v385_v46 }
 0x2b2   :  { %v517_v48 = vpop.f32.mrf.mxu0 }
 0x2b3   :  { %392 = vst.msk [vmem:[%s815_s9] sm:$0xff] %vm391_vm3, %v386_v47 }
 0x2b4   :  { %v388_v49 = vpop.f32.mrf.mxu0 }
 0x2b6   :  { %v518_v50 = vpop.f32.mrf.mxu0 }
 0x2b7   :  { %677 = dma.done.wait [#allocation4], 128  }
 0x2b8   :  { %678 = vsyncadd [#allocation4], 4294967168 }
 0x2b9   :  { %679 = dma.done.wait [#allocation12], 128  }
 0x2ba   :  { %680 = vsyncadd [#allocation12], 4294967168 }
 0x2bb   :  { %423 = vsyncpa [#allocation3], 1 }
 0x2bc   :  { %424 = vsyncpa [#allocation6], 1 }
 0x2bd   :  { %425 = vsyncpa [#allocation9], 1 }
 0x2be   :  { %426 = vsyncpa [#allocation4], 1 }
 0x2bf   :  { %427 = vsyncpa [#allocation12], 1 }

</bundles_post_ra>
